<compile_context>
chip_gen: v7x
topology: tpu7x:2x2x1
jax: 0.10.0
libtpu: 0.0.40
codegen_flags: <defaults>
</compile_context>

<pallas_src>
import functools

import jax
import jax.numpy as jnp
from jax.experimental import pallas as pl
from jax.experimental.pallas import tpu as pltpu


# ----------------------------- tiling helpers ------------------------------ #

_ROW_TILES = (512, 256, 128, 64, 32, 16, 8)     # sublane-ish (2nd-minor) dims
_LANE_TILES = (512, 256, 128)                   # lane (minor) dims


def _pick_tile(dim, candidates):
    for c in candidates:
        if dim % c == 0:
            return c
    return dim  # full extent (always legal for BlockSpec)


# ----------------------------- Pallas kernels ------------------------------ #

def _matmul_kernel(*refs, activation, has_residual):
    if has_residual:
        x_ref, w_ref, b_ref, r_ref, o_ref, acc_ref = refs
    else:
        x_ref, w_ref, b_ref, o_ref, acc_ref = refs
        r_ref = None
    k = pl.program_id(2)

    @pl.when(k == 0)
    def _():
        acc_ref[...] = jnp.zeros_like(acc_ref)

    acc_ref[...] += jnp.dot(x_ref[...], w_ref[...],
                            preferred_element_type=jnp.float32)

    @pl.when(k == pl.num_programs(2) - 1)
    def _():
        acc = acc_ref[...] + b_ref[...].astype(jnp.float32)
        if activation == "gelu_tanh":
            # PyTorch "gelu(tanh)" approximation (SigLIP MLP activation), in f32.
            c = 0.7978845608028654  # sqrt(2/pi)
            acc = 0.5 * acc * (1.0 + jnp.tanh(c * (acc + 0.044715 * acc * acc * acc)))
        if r_ref is not None:
            acc = acc + r_ref[...].astype(jnp.float32)
        o_ref[...] = acc.astype(o_ref.dtype)


def matmul_bias(x, w, b, activation=None, residual=None, out_dtype=None):
    """x: [M, K] (bf16), w: [K, N] (bf16), b: [N] (f32) -> [M, N].

    Optionally fuses a gelu-tanh activation and/or a residual add ([M, N])
    into the epilogue of the K-reduction.
    """
    M, K = x.shape
    Kw, N = w.shape
    assert K == Kw
    out_dtype = out_dtype or x.dtype

    tm = _pick_tile(M, _ROW_TILES)
    tn = _pick_tile(N, _LANE_TILES)
    tk = _pick_tile(K, _LANE_TILES)
    grid = (M // tm, N // tn, K // tk)

    in_specs = [
        pl.BlockSpec((tm, tk), lambda i, j, kk: (i, kk)),
        pl.BlockSpec((tk, tn), lambda i, j, kk: (kk, j)),
        pl.BlockSpec((1, tn), lambda i, j, kk: (0, j)),
    ]
    args = [x, w, b.reshape(1, N)]
    if residual is not None:
        in_specs.append(pl.BlockSpec((tm, tn), lambda i, j, kk: (i, j)))
        args.append(residual)

    itemsize = 2  # bf16 streams
    bytes_accessed = (M * K + K * N + 2 * M * N) * itemsize + 4 * N
    if residual is not None:
        bytes_accessed += M * N * itemsize
    transcendentals = M * N if activation == "gelu_tanh" else 0

    return pl.pallas_call(
        functools.partial(_matmul_kernel, activation=activation,
                          has_residual=residual is not None),
        out_shape=jax.ShapeDtypeStruct((M, N), out_dtype),
        grid=grid,
        in_specs=in_specs,
        out_specs=pl.BlockSpec((tm, tn), lambda i, j, kk: (i, j)),
        scratch_shapes=[pltpu.VMEM((tm, tn), jnp.float32)],
        compiler_params=pltpu.CompilerParams(
            dimension_semantics=("parallel", "parallel", "arbitrary")),
        cost_estimate=pl.CostEstimate(
            flops=2 * M * N * K,
            transcendentals=transcendentals,
            bytes_accessed=bytes_accessed),
    )(*args)


def _layernorm_kernel(x_ref, g_ref, b_ref, o_ref, *, eps):
    x = x_ref[...].astype(jnp.float32)
    mean = jnp.mean(x, axis=-1, keepdims=True)
    xc = x - mean
    var = jnp.mean(xc * xc, axis=-1, keepdims=True)
    xn = xc * jax.lax.rsqrt(var + eps)
    o_ref[...] = (xn * g_ref[...] + b_ref[...]).astype(o_ref.dtype)


def layernorm(x, gamma, beta, eps, out_dtype=None):
    """x: [M, D] (bf16), gamma/beta: [D] (f32) -> [M, D]; f32 internal math."""
    M, D = x.shape
    out_dtype = out_dtype or x.dtype
    tm = _pick_tile(M, _ROW_TILES)
    return pl.pallas_call(
        functools.partial(_layernorm_kernel, eps=eps),
        out_shape=jax.ShapeDtypeStruct((M, D), out_dtype),
        grid=(M // tm,),
        in_specs=[
            pl.BlockSpec((tm, D), lambda i: (i, 0)),
            pl.BlockSpec((1, D), lambda i: (0, 0)),
            pl.BlockSpec((1, D), lambda i: (0, 0)),
        ],
        out_specs=pl.BlockSpec((tm, D), lambda i: (i, 0)),
        compiler_params=pltpu.CompilerParams(dimension_semantics=("parallel",)),
        cost_estimate=pl.CostEstimate(
            flops=8 * M * D, transcendentals=M,
            bytes_accessed=4 * M * D + 8 * D),
    )(x, gamma.reshape(1, D), beta.reshape(1, D))


def _flash_attn_kernel(q_ref, k_ref, v_ref, o_ref, m_sc, l_sc, acc_sc, *, scale):
    ki = pl.program_id(2)

    @pl.when(ki == 0)
    def _():
        m_sc[...] = jnp.full_like(m_sc, -jnp.inf)
        l_sc[...] = jnp.zeros_like(l_sc)
        acc_sc[...] = jnp.zeros_like(acc_sc)

    q = q_ref[0]          # (H, tq, dh) bf16
    k = k_ref[0]          # (H, tk, dh) bf16
    v = v_ref[0]          # (H, tk, dh) bf16

    # q.k^T via batched dot_general (no explicit transpose), f32 scores.
    s = jnp.einsum("hqd,hkd->hqk", q, k,
                   preferred_element_type=jnp.float32) * scale

    m_prev = m_sc[...]
    m_new = jnp.maximum(m_prev, jnp.max(s, axis=-1, keepdims=True))
    alpha = jnp.exp(m_prev - m_new)
    p = jnp.exp(s - m_new)                                    # (H, tq, tk) f32
    l_sc[...] = alpha * l_sc[...] + jnp.sum(p, axis=-1, keepdims=True)
    acc_sc[...] = alpha * acc_sc[...] + jnp.einsum(
        "hqk,hkd->hqd", p.astype(v.dtype), v,
        preferred_element_type=jnp.float32)
    m_sc[...] = m_new

    @pl.when(ki == pl.num_programs(2) - 1)
    def _():
        inv_l = pl.reciprocal(l_sc[...], approx=True)
        o_ref[0] = (acc_sc[...] * inv_l).astype(o_ref.dtype)


def attention(q, k, v, scale):
    """q/k/v: [B, H, S, dh] (bf16) -> [B, H, S, dh]; flash-style online softmax,
    all heads processed per grid step."""
    B, H, S, dh = q.shape
    tq = _pick_tile(S, (256, 128, 64, 32, 16, 8))
    tk = _pick_tile(S, (256, 128, 64, 32, 16, 8))
    grid = (B, S // tq, S // tk)

    q_spec = pl.BlockSpec((1, H, tq, dh), lambda b, qi, ki: (b, 0, qi, 0))
    kv_spec = pl.BlockSpec((1, H, tk, dh), lambda b, qi, ki: (b, 0, ki, 0))
    o_spec = pl.BlockSpec((1, H, tq, dh), lambda b, qi, ki: (b, 0, qi, 0))

    return pl.pallas_call(
        functools.partial(_flash_attn_kernel, scale=scale),
        out_shape=jax.ShapeDtypeStruct((B, H, S, dh), q.dtype),
        grid=grid,
        in_specs=[q_spec, kv_spec, kv_spec],
        out_specs=o_spec,
        scratch_shapes=[
            pltpu.VMEM((H, tq, 1), jnp.float32),    # running max
            pltpu.VMEM((H, tq, 1), jnp.float32),    # running denom
            pltpu.VMEM((H, tq, dh), jnp.float32),   # output accumulator
        ],
        compiler_params=pltpu.CompilerParams(
            dimension_semantics=("parallel", "parallel", "arbitrary")),
        cost_estimate=pl.CostEstimate(
            flops=4 * B * H * S * S * dh,
            transcendentals=B * H * S * S,
            bytes_accessed=8 * B * H * S * dh),
    )(q, k, v)


# ------------------------------ Model glue --------------------------------- #

def init_params(key, *, hidden, intermediate, heads, layers, channels, patch,
                num_patches):
    w_dtype = jnp.bfloat16  # MXU-friendly weight storage

    def normal(k, shape, scale=0.02):
        return (scale * jax.random.normal(k, shape, dtype=jnp.float32)).astype(w_dtype)

    keys = iter(jax.random.split(key, 8 + 16 * layers))
    params = {
        "patch_w": normal(next(keys), (channels * patch * patch, hidden)),
        "patch_b": jnp.zeros((hidden,), jnp.float32),
        "pos_emb": normal(next(keys), (num_patches, hidden)),
        "post_ln_g": jnp.ones((hidden,), jnp.float32),
        "post_ln_b": jnp.zeros((hidden,), jnp.float32),
        "layers": [],
    }
    for _ in range(layers):
        wq = normal(next(keys), (hidden, hidden))
        wk = normal(next(keys), (hidden, hidden))
        wv = normal(next(keys), (hidden, hidden))
        lp = {
            "ln1_g": jnp.ones((hidden,), jnp.float32),
            "ln1_b": jnp.zeros((hidden,), jnp.float32),
            # fused QKV projection: single [D, 3D] matmul (reads hn once).
            "wqkv": jnp.concatenate([wq, wk, wv], axis=1),
            "bqkv": jnp.zeros((3 * hidden,), jnp.float32),
            "wo": normal(next(keys), (hidden, hidden)),
            "bo": jnp.zeros((hidden,), jnp.float32),
            "ln2_g": jnp.ones((hidden,), jnp.float32),
            "ln2_b": jnp.zeros((hidden,), jnp.float32),
            "fc1_w": normal(next(keys), (hidden, intermediate)),
            "fc1_b": jnp.zeros((intermediate,), jnp.float32),
            "fc2_w": normal(next(keys), (intermediate, hidden)),
            "fc2_b": jnp.zeros((hidden,), jnp.float32),
        }
        params["layers"].append(lp)
    return params


def siglip_vision_forward(pixel_values, params, *, patch, hidden, heads, eps):
    B, C, H, W = pixel_values.shape
    nH, nW = H // patch, W // patch
    S = nH * nW                     # num image tokens (num_patches)
    D = hidden
    dh = D // heads
    scale = dh ** -0.5

    # --- SiglipVisionEmbedding: Conv2d(kernel=stride=patch) == patchify + matmul
    x = pixel_values.reshape(B, C, nH, patch, nW, patch)
    x = x.transpose(0, 2, 4, 1, 3, 5).reshape(B * S, C * patch * patch)
    x = x.astype(jnp.bfloat16)
    h = matmul_bias(x, params["patch_w"], params["patch_b"])        # [B*S, D]
    h = (h.reshape(B, S, D) + params["pos_emb"][None]).reshape(B * S, D)

    # --- SiglipEncoder: stack of pre-LN transformer layers
    for lp in params["layers"]:
        # self-attention block
        resid = h
        hn = layernorm(h, lp["ln1_g"], lp["ln1_b"], eps)
        qkv = matmul_bias(hn, lp["wqkv"], lp["bqkv"])               # [B*S, 3D]
        q, k, v = jnp.split(qkv, 3, axis=-1)

        def split_heads(t):
            return t.reshape(B, S, heads, dh).transpose(0, 2, 1, 3)  # [B,H,S,dh]

        o = attention(split_heads(q), split_heads(k), split_heads(v), scale)
        o = o.transpose(0, 2, 1, 3).reshape(B * S, D)
        # TODO(synk): attention_dropout is 0.0 in the config, so no dropout kernel.
        # residual add fused into the out-proj epilogue
        h = matmul_bias(o, lp["wo"], lp["bo"], residual=resid)

        # MLP block: fc1 + gelu-tanh fused; fc2 with fused residual add
        resid = h
        hn = layernorm(h, lp["ln2_g"], lp["ln2_b"], eps)
        m = matmul_bias(hn, lp["fc1_w"], lp["fc1_b"], activation="gelu_tanh")
        h = matmul_bias(m, lp["fc2_w"], lp["fc2_b"], residual=resid)

    # --- post_layernorm (emit f32, matching the PyTorch module's output dtype)
    h = layernorm(h, params["post_ln_g"], params["post_ln_b"], eps,
                  out_dtype=jnp.float32)
    return h.reshape(B, S, D)


# ---------------------------------- main ------------------------------------ #

if __name__ == "__main__":
    # Small config consistent with SiglipVisionConfig semantics.
    B, C = 2, 3
    IMAGE, PATCH = 16, 8
    HIDDEN, INTERMEDIATE = 32, 64
    HEADS, LAYERS = 4, 2
    EPS = 1e-6
    NUM_PATCHES = (IMAGE // PATCH) ** 2   # 4

    key = jax.random.PRNGKey(0)
    k_pix, k_params = jax.random.split(key)
    pixel_values = jax.random.normal(k_pix, (B, C, IMAGE, IMAGE), dtype=jnp.float32)

    params = init_params(
        k_params,
        hidden=HIDDEN, intermediate=INTERMEDIATE, heads=HEADS, layers=LAYERS,
        channels=C, patch=PATCH, num_patches=NUM_PATCHES,
    )

    out = siglip_vision_forward(
        pixel_values, params, patch=PATCH, hidden=HIDDEN, heads=HEADS, eps=EPS,
    )
    out = jax.block_until_ready(out)
    assert out.shape == (B, NUM_PATCHES, HIDDEN), out.shape
    assert jnp.all(jnp.isfinite(out))
    print("KERNEL_OK")
</pallas_src>

<mosaic_0001>
module attributes {stable_mosaic.version = 11 : i64} {
  func.func @_matmul_kernel(%arg0: i32, %arg1: i32, %arg2: i32, %arg3: memref<8x192xbf16, #tpu.memory_space<vmem>>, %arg4: memref<192x32xbf16, #tpu.memory_space<vmem>>, %arg5: memref<1x32xf32, #tpu.memory_space<vmem>>, %arg6: memref<8x32xbf16, #tpu.memory_space<vmem>>, %arg7: memref<8x32xf32, #tpu.memory_space<vmem>>) attributes {dimension_semantics = [#tpu.dimension_semantics<parallel>, #tpu.dimension_semantics<parallel>, #tpu.dimension_semantics<arbitrary>], iteration_bounds = array<i64: 1, 1, 1>, scalar_prefetch = 0 : i64, scratch_operands = 1 : i64, tpu.core_type = #tpu.core_type<tc>, window_params = [{transform_indices = @transform_0, window_bounds = array<i64: 8, 192>}, {transform_indices = @transform_1, window_bounds = array<i64: 192, 32>}, {transform_indices = @transform_2, window_bounds = array<i64: 1, 32>}, {transform_indices = @transform_3, window_bounds = array<i64: 8, 32>}]} {
    %c0_i32 = arith.constant 0 : i32
    %0 = arith.cmpi eq, %arg2, %c0_i32 : i32
    %1 = arith.extui %0 : i1 to i32
    %c0_i32_0 = arith.constant 0 : i32
    %2 = arith.cmpi ne, %1, %c0_i32_0 : i32
    scf.if %2 {
      %cst_10 = arith.constant 0.000000e+00 : f32
      %12 = vector.broadcast %cst_10 : f32 to vector<8x32xf32>
      %c0_11 = arith.constant 0 : index
      %c0_12 = arith.constant 0 : index
      %13 = vector.load %arg7[%c0_11, %c0_12] : memref<8x32xf32, #tpu.memory_space<vmem>>, vector<8x32xf32>
      tpu.vector_store %arg7[%c0_11, %c0_12], %12 {strides = array<i32>} : memref<8x32xf32, #tpu.memory_space<vmem>>, vector<8x32xf32>,
    } else {
    }
    %c0 = arith.constant 0 : index
    %c0_1 = arith.constant 0 : index
    %3 = vector.load %arg7[%c0, %c0_1] : memref<8x32xf32, #tpu.memory_space<vmem>>, vector<8x32xf32>
    %c0_2 = arith.constant 0 : index
    %c0_3 = arith.constant 0 : index
    %4 = vector.load %arg3[%c0_2, %c0_3] : memref<8x192xbf16, #tpu.memory_space<vmem>>, vector<8x192xbf16>
    %c0_4 = arith.constant 0 : index
    %c0_5 = arith.constant 0 : index
    %5 = vector.load %arg4[%c0_4, %c0_5] : memref<192x32xbf16, #tpu.memory_space<vmem>>, vector<192x32xbf16>
    %cst = arith.constant dense<0.000000e+00> : vector<8x32xf32>
    %6 = tpu.matmul %4, %5, %cst {dimension_numbers = #tpu.dot_dimension_numbers<[1], [0], [0], [1], [0, 0, 1, 1], [], []>} : vector<8x192xbf16>, vector<192x32xbf16>, vector<8x32xf32> -> vector<8x32xf32>
    %7 = arith.addf %3, %6 : vector<8x32xf32>
    %c0_6 = arith.constant 0 : index
    %c0_7 = arith.constant 0 : index
    %8 = vector.load %arg7[%c0_6, %c0_7] : memref<8x32xf32, #tpu.memory_space<vmem>>, vector<8x32xf32>
    tpu.vector_store %arg7[%c0_6, %c0_7], %7 {strides = array<i32>} : memref<8x32xf32, #tpu.memory_space<vmem>>, vector<8x32xf32>,
    %c0_i32_8 = arith.constant 0 : i32
    %9 = arith.cmpi eq, %arg2, %c0_i32_8 : i32
    %10 = arith.extui %9 : i1 to i32
    %c0_i32_9 = arith.constant 0 : i32
    %11 = arith.cmpi ne, %10, %c0_i32_9 : i32
    scf.if %11 {
      %c0_10 = arith.constant 0 : index
      %c0_11 = arith.constant 0 : index
      %12 = vector.load %arg7[%c0_10, %c0_11] : memref<8x32xf32, #tpu.memory_space<vmem>>, vector<8x32xf32>
      %c0_12 = arith.constant 0 : index
      %c0_13 = arith.constant 0 : index
      %13 = vector.load %arg5[%c0_12, %c0_13] : memref<1x32xf32, #tpu.memory_space<vmem>>, vector<1x32xf32>
      %14 = vector.broadcast %13 : vector<1x32xf32> to vector<8x32xf32>
      %15 = arith.addf %12, %14 : vector<8x32xf32>
      %16 = arith.truncf %15 : vector<8x32xf32> to vector<8x32xbf16>
      %c0_14 = arith.constant 0 : index
      %c0_15 = arith.constant 0 : index
      %17 = vector.load %arg6[%c0_14, %c0_15] : memref<8x32xbf16, #tpu.memory_space<vmem>>, vector<8x32xbf16>
      tpu.vector_store %arg6[%c0_14, %c0_15], %16 {strides = array<i32>} : memref<8x32xbf16, #tpu.memory_space<vmem>>, vector<8x32xbf16>,
    } else {
    }
    return
  }
  func.func @transform_0(%arg0: i32, %arg1: i32, %arg2: i32) -> (i32, i32) {
    %c0_i32 = arith.constant 0 : i32
    return %arg0, %arg2 : i32, i32
  }
  func.func @transform_1(%arg0: i32, %arg1: i32, %arg2: i32) -> (i32, i32) {
    %c0_i32 = arith.constant 0 : i32
    return %arg2, %arg1 : i32, i32
  }
  func.func @transform_2(%arg0: i32, %arg1: i32, %arg2: i32) -> (i32, i32) {
    %c0_i32 = arith.constant 0 : i32
    %c0_i32_0 = arith.constant 0 : i32
    return %c0_i32, %arg1 : i32, i32
  }
  func.func @transform_3(%arg0: i32, %arg1: i32, %arg2: i32) -> (i32, i32) {
    %c0_i32 = arith.constant 0 : i32
    return %arg0, %arg1 : i32, i32
  }
}

</mosaic_0001>

<bundles_post_ra>
// kernel: tpu_custom_call.1
= control target key start
LH: loop header
LB: loop body
LE: loop exit
PB: predicated region body
PF: predicated region fallthrough
CT: control target
= control target key end

     0   :  { %v259_v1 = vmov 0   ;;  %vm20_vm0 = vcmask 261120   ;;  %v260_v3 = vmov 0.0   ;;  %vm126_vm1 = vcmask 523264   ;;  %s338_s0 = inlined_call_operand.vmem [shape: bf16[8,192], index: 0, kind: input, shape index: {}]   ;;  %s339_s1 = inlined_call_operand.vmem [shape: bf16[192,32], index: 1, kind: input, shape index: {}]   ;;  %s340_s2 = inlined_call_operand.vmem [shape: f32[1,32], index: 2, kind: input, shape index: {}]   ;;  %s341_s3 = inlined_call_operand.hbm [shape: bf16[8,32], index: 3, kind: output, shape index: {}]  }
   0x1   :  { %v221_v0 = vld [vmem:[%s339_s1] sm:$0xff]   ;;  %130 = vmatprep.subr.bf16.mxu0 %v259_v1  ;;  %v222_v2 = vld [vmem:[%s339_s1 + $0x8] sm:$0xff]   ;;  %21 = vst.msk [vmem:[#allocation2] sm:$0xff] %vm20_vm0, %v260_v3  ;;  %v223_v4 = vld [vmem:[%s339_s1 + $0x10] sm:$0xff]  }
   0x2   :  { %131 = vmatpush1.bf16.msra.mxu0 %v221_v0  ;;  %v224_v5 = vld [vmem:[%s339_s1 + $0x18] sm:$0xff]   ;;  %v23_v6 = vld [vmem:[%s338_s0] sm:$0xff] }
   0x3   :  { %132 = vmatprep.subr.bf16.mxu0 %v259_v1 }
   0x6   :  { %133 = vmatpush1.bf16.msra.mxu0 %v222_v2 }
   0x7   :  { %134 = vmatprep.subr.bf16.mxu0 %v259_v1 }
   0xa   :  { %135 = vmatpush1.bf16.msra.mxu0 %v223_v4 }
   0xb   :  { %136 = vmatprep.subr.bf16.mxu0 %v259_v1 }
   0xc   :  { %8 = vsyncpa [#allocation4], 0  ;;  %v203_v7 = vcombine.high %v23_v6, %v23_v6  ;;  %v225_v8 = vld [vmem:[%s339_s1 + $0x20] sm:$0xff]   ;;  %v226_v9 = vld [vmem:[%s339_s1 + $0x28] sm:$0xff]   ;;  %v202_v16 = vcombine.low %v23_v6, %v23_v6  ;;  %s261_s12 = smov [#allocation3]   ;;  %vm186_vm2 = vcmask 257024  }
   0xd   :  { %v227_v10 = vld [vmem:[%s339_s1 + $0x30] sm:$0xff]   ;;  %v228_v11 = vld [vmem:[%s339_s1 + $0x38] sm:$0xff]   ;;  %v229_v12 = vld [vmem:[%s339_s1 + $0x40] sm:$0xff]   ;;  %s194_s13 = sshll.u32 %s261_s12, 4  ;;  %s195_s13 = int_to_ptr.vmem [resolvable:$true] %s194_s13 }
   0xe   :  { %137 = vmatpush1.bf16.msra.mxu0 %v224_v5  ;;  %216 = vmatprep.mubr.msk.bf16.mxu0 %vm126_vm1, %v203_v7  ;;  %v230_v13 = vld [vmem:[%s339_s1 + $0x48] sm:$0xff]   ;;  %v231_v14 = vld [vmem:[%s339_s1 + $0x50] sm:$0xff]   ;;  %v232_v15 = vld [vmem:[%s339_s1 + $0x58] sm:$0xff]   ;;  %s235_s1 = scalar_lea.vmem %s195_s13, 64  ;;  %p240_p1 = scmp.lt.s32.totalorder %s195_s13, %s195_s13 }
   0xf   :  { %138 = vmatprep.subr.bf16.mxu0 %v259_v1  ;;  %v22_v17 = vld [vmem:[#allocation2] sm:$0xff]  ;;  %p236_p0 = scmp.ne.s32.totalorder %s195_s13, %s235_s1  ;;  %p241_p2 = scmp.lt.s32.totalorder %s235_s1, %s235_s1 }
  0x10   :  { %v217_v23 = vld [vmem:[%s340_s2] ss:$0 sm:$0xff] }
  0x11   :  { %p242_p3 = por %p241_p2, %p240_p1 }
  0x12   :  { %139 = vmatpush1.bf16.msra.mxu0 %v225_v8 }
  0x13   :  { %140 = vmatprep.subr.bf16.mxu0 %v259_v1  ;;  %p243_p4 = pnand %p242_p3, %p236_p0 }
  0x16   :  { %141 = vmatpush1.bf16.msra.mxu0 %v226_v9 }
  0x17   :  { %142 = vmatprep.subr.bf16.mxu0 %v259_v1 }
  0x1a   :  { %143 = vmatpush1.bf16.msra.mxu0 %v227_v10 }
  0x1b   :  { %144 = vmatprep.subr.bf16.mxu0 %v259_v1 }
  0x1e   :  { %145 = vmatpush1.bf16.msra.mxu0 %v228_v11 }
  0x1f   :  { %146 = vmatprep.subr.bf16.mxu0 %v259_v1 }
  0x22   :  { %147 = vmatpush1.bf16.msra.mxu0 %v229_v12 }
  0x23   :  { %148 = vmatprep.subr.bf16.mxu0 %v259_v1 }
  0x26   :  { %149 = vmatpush1.bf16.msra.mxu0 %v230_v13 }
  0x27   :  { %150 = vmatprep.subr.bf16.mxu0 %v259_v1 }
  0x2a   :  { %151 = vmatpush1.bf16.msra.mxu0 %v231_v14 }
  0x2b   :  { %152 = vmatprep.subr.bf16.mxu0 %v259_v1 }
  0x2e   :  { %153 = vmatpush1.bf16.msra.mxu0 %v232_v15 }
  0x31   :  { %163 = vmatmul.mubr.bf16.vlgmr.msra.gmra.mrb[0].mxu0 %v202_v16 }
 0x104   :  { %v164_v18 = vpop.f32.mrb[0].mxu0 }
 0x105   :  { %v170_v19 = vadd.f32 %v164_v18, %v22_v17  ;;  %v166_v20 = vpop.f32.mrb[1].mxu0 }
 0x106   :  { %v167_v21 = vpop.f32.mrb[2].mxu0 }
 0x107   :  { %172 = vst.msk [vmem:[#allocation2] sm:$0xff] %vm20_vm0, %v170_v19  ;;  %v168_v22 = vpop.f32.mrb[3].mxu0 }
 0x10e   :  { %v176_v24 = vld [vmem:[#allocation2] sm:$0xff] }
 0x10f   :  { %v184_v25 = vadd.f32 %v217_v23, %v176_v24 }
 0x111   :  { %v185_v26 = vpack.c.bf16 %v184_v25, %v184_v25 }
 0x113   :  { %187 = vst.msk [vmem:[#allocation3] sm:$0xf] %vm186_vm2, %v185_v26 }
 0x114   :  { %246 = shalt.err (!%p243_p4)
}
 0x115   :  { %s247_s16 = scalar_lea.hbm %s341_s3, 64 }
 0x116   :  { %p248_p5 = scmp.ne.s32.totalorder %s341_s3, %s247_s16  ;;  %p251_p6 = scmp.lt.u32.totalorder %s247_s16, %s341_s3 }
 0x118   :  { %p253_p7 = pnand %p251_p6, %p248_p5 }
 0x11a   :  { %256 = shalt.err (!%p253_p7)
}
 0x11b   :  { %197 = dma.vmem_to_hbm [thread:$0]  %s195_s13, 64, %s341_s3, [#allocation4]  }
 0x11c   :  { %257 = dma.done.wait [#allocation4], 64  }
 0x11d   :  { %258 = vsyncadd [#allocation4], 4294967232 }
 0x11e   :  { %201 = vsyncpa [#allocation4], 1 }

</bundles_post_ra>
